<compile_context>
chip_gen: v6e
topology: v6e:2x2x1
jax: 0.10.0
libtpu: 0.0.40
codegen_flags: <defaults>
</compile_context>

<pallas_src>
import functools

import jax
import jax.numpy as jnp
from jax.experimental import pallas as pl
from jax.experimental.pallas import tpu as pltpu


# ---------------------------------------------------------------------------
# Kernel
# ---------------------------------------------------------------------------
def _modular_pool_kernel(x_ref, w_ref, b_ref, o_ref, pool_acc, out_acc, *,
                         pool_type, seq_len, num_branches, matmul_dtype):
    """Grid = (batch_tile, branch, seq_tile); branch & seq revisit the output."""
    k = pl.program_id(1)
    si = pl.program_id(2)
    n_k = pl.num_programs(1)
    n_s = pl.num_programs(2)

    @pl.when(jnp.logical_and(k == 0, si == 0))
    def _():
        out_acc[...] = jnp.zeros(out_acc.shape, jnp.float32)

    @pl.when(si == 0)
    def _():
        if pool_type == "avg":
            pool_acc[...] = jnp.zeros(pool_acc.shape, jnp.float32)
        else:  # running max must start at -inf, not zero
            pool_acc[...] = jnp.full(pool_acc.shape, -jnp.inf, jnp.float32)

    # x_ref view: (b_tile, s_tile, E) for the current branch k.
    if pool_type == "avg":
        # Widen only the current chunk; keep f32 accumulation for the mean.
        pool_acc[...] += jnp.sum(x_ref[...].astype(jnp.float32), axis=1)
    else:
        # Reduce in the native dtype (bf16 compares on v6e/v7x VPU), then
        # widen a single (b_tile, E) slab per step.
        pool_acc[...] = jnp.maximum(
            pool_acc[...], jnp.max(x_ref[...], axis=1).astype(jnp.float32))

    @pl.when(si == n_s - 1)
    def _():
        pooled = pool_acc[...]                      # (b_tile, E) f32
        if pool_type == "avg":
            pooled = pooled * (1.0 / seq_len)       # divide by the TRUE S
        # Per-branch Linear: weights arrive pre-transposed (E, O) in their
        # native dtype -> no in-kernel transpose, no weight up-cast, f32
        # accumulation on the MXU.
        y = jnp.dot(pooled.astype(matmul_dtype), w_ref[...],
                    preferred_element_type=jnp.float32)
        y = y + b_ref[...].astype(jnp.float32)      # (1, O) broadcast
        y = jnp.maximum(y, 0.0)                     # ReLU (dropout = identity)
        out_acc[...] += y                           # sum over branches

    @pl.when(jnp.logical_and(k == n_k - 1, si == n_s - 1))
    def _():
        o_ref[...] = (out_acc[...] * (1.0 / num_branches)).astype(o_ref.dtype)


# ---------------------------------------------------------------------------
# Tiling helpers
# ---------------------------------------------------------------------------
def _round_up(x, m):
    return ((x + m - 1) // m) * m


def _vmem_limit_bytes():
    """Generation-aware scoped-VMEM budget (<= 3/4 of physical, <= 96 MiB)."""
    cap = 64 * 1024 * 1024  # conservative default (v7x per-TC physical)
    try:
        info = pltpu.get_tpu_info()
        cap = int(getattr(info, "vmem_capacity_bytes", cap) or cap)
    except Exception:
        pass
    return int(min(cap * 3 // 4, 96 * 1024 * 1024))


def _pick_batch_tile(batch, embed, itemsize, budget):
    """Batch tile: multiple-of-8 divisor of B when possible, capped so the
    double-buffered x block (at the minimum s_tile of 8) fits `budget`, and
    capped at B//2 when B >= 16 so v7x's two TensorCores both get work."""
    max_b = max(8, budget // (2 * 8 * max(embed * itemsize, 1)))
    if batch % 8 != 0:
        # Full-extent batch block is always layout-legal; intended use is
        # small late-fusion batches so this comfortably fits the budget.
        # TODO(synk): pad B in the wrapper for huge non-multiple-of-8 batches.
        return batch
    cap = max_b
    if batch >= 16:
        cap = min(cap, batch // 2)      # guarantee >= 2 batch tiles (megacore)
    cap = max(8, (min(cap, batch) // 8) * 8)
    t = cap
    while t >= 8:
        if batch % t == 0:
            return t
        t -= 8
    return 8  # unreachable: 8 | batch


def _pick_seq_tile(seq, b_tile, embed, itemsize, budget):
    """Seq tile + padded seq length.  Keeps 2 * b_tile * s_tile * E * itemsize
    under `budget`; prefers full-extent or divisor tiles (no padding), else
    pads S in the wrapper (padding value is pool-type aware)."""
    max_s = max(8, (budget // (2 * max(b_tile * embed * itemsize, 1)) // 8) * 8)
    if seq <= max_s:
        return seq, seq                      # full extent — always legal
    if seq % 8 == 0:
        t = max_s
        while t >= 8:
            if seq % t == 0:
                return t, seq                # divisor — no padding
            t -= 8
    t = max(8, max_s)
    return t, _round_up(seq, t)


# ---------------------------------------------------------------------------
# Wrapper
# ---------------------------------------------------------------------------
def modular_pool_forward(x_stacked, w_stacked, b_stacked, *, pool_type="avg"):
    """x_stacked: (K, B, S, E), w_stacked: (K, O, E), b_stacked: (K, O)."""
    if pool_type not in ("avg", "max"):
        # TODO(synk): pool_type == 'none' keeps the seq axis and breaks the
        # Linear-on-(B, E) contract of this forward; not implemented here.
        raise ValueError("pool_type must be 'avg' or 'max'")

    K, B, S, E = x_stacked.shape
    O = w_stacked.shape[1]
    out_dtype = x_stacked.dtype
    itemsize = jnp.dtype(x_stacked.dtype).itemsize

    # ---- tiling (generation-aware) ---------------------------------------
    vmem_limit = _vmem_limit_bytes()
    x_budget = vmem_limit // 2               # double-buffered x blocks' share
    b_tile = _pick_batch_tile(B, E, itemsize, x_budget)
    s_tile, s_pad = _pick_seq_tile(S, b_tile, E, itemsize, x_budget)

    # ---- wrapper-side prep (tiny / conditional) ---------------------------
    # x stays in its NATIVE (K, B, S, E) layout: no transpose, no repack.
    x_in = x_stacked
    if s_pad != S:
        # Padding value cannot affect the pool: 0 for avg (we divide by the
        # true S in-kernel), dtype-min for max.
        pad_val = 0.0 if pool_type == "avg" else float(jnp.finfo(x_stacked.dtype).min)
        x_in = jnp.pad(x_stacked, ((0, 0), (0, 0), (0, s_pad - S), (0, 0)),
                       constant_values=pad_val)
    # Pre-transposed per-branch weights (K, E, O): tiny, one-time, removes the
    # in-kernel transpose.  Kept in their native dtype (no f32 up-cast).
    w_t = jnp.transpose(w_stacked, (0, 2, 1))
    b_in = b_stacked.reshape(K, 1, O)

    grid = (B // b_tile, K, s_pad // s_tile)

    kernel = functools.partial(
        _modular_pool_kernel,
        pool_type=pool_type, seq_len=S, num_branches=K,
        matmul_dtype=w_stacked.dtype)

    cost = pl.CostEstimate(
        flops=2 * K * B * S * E + 2 * K * B * E * O + 2 * B * O,
        transcendentals=0,
        bytes_accessed=(x_in.size * itemsize
                        + w_t.size * jnp.dtype(w_t.dtype).itemsize
                        + b_in.size * jnp.dtype(b_in.dtype).itemsize
                        + B * O * jnp.dtype(out_dtype).itemsize),
    )

    return pl.pallas_call(
        kernel,
        out_shape=jax.ShapeDtypeStruct((B, O), out_dtype),
        grid_spec=pltpu.PrefetchScalarGridSpec(
            num_scalar_prefetch=0,
            grid=grid,
            in_specs=[
                # Native-layout x: branch axis squeezed, (b_tile, s_tile, E) view.
                pl.BlockSpec((pl.Squeezed(), b_tile, s_tile, E),
                             lambda bi, k, si: (k, bi, si, 0)),
                # Per-branch pre-transposed weight (E, O) — resident per branch.
                pl.BlockSpec((pl.Squeezed(), E, O),
                             lambda bi, k, si: (k, 0, 0)),
                # Per-branch bias (1, O).
                pl.BlockSpec((pl.Squeezed(), 1, O),
                             lambda bi, k, si: (k, 0, 0)),
            ],
            out_specs=pl.BlockSpec((b_tile, O), lambda bi, k, si: (bi, 0)),
            scratch_shapes=[
                pltpu.VMEM((b_tile, E), jnp.float32),   # running pool acc
                pltpu.VMEM((b_tile, O), jnp.float32),   # branch-sum acc
            ],
        ),
        compiler_params=pltpu.CompilerParams(
            # B shards across TensorCores (v7x megacore); K and S revisit the
            # output block so they must be "arbitrary" (S last, streamed).
            dimension_semantics=("parallel", "arbitrary", "arbitrary"),
            vmem_limit_bytes=vmem_limit,
        ),
        cost_estimate=cost,
    )(x_in, w_t, b_in)


# ---------------------------------------------------------------------------
# Pure-JAX reference (mirrors the PyTorch forward in eval mode)
# ---------------------------------------------------------------------------
def reference_forward(x_stacked, w_stacked, b_stacked, pool_type="avg"):
    if pool_type == "avg":
        pooled = jnp.mean(x_stacked, axis=2)                 # (K, B, E)
    else:
        pooled = jnp.max(x_stacked, axis=2)
    y = jnp.einsum("kbe,koe->kbo", pooled, w_stacked) + b_stacked[:, None, :]
    y = jnp.maximum(y, 0.0)
    return jnp.mean(y, axis=0)                               # mean over branches


if __name__ == "__main__":
    # Small shapes consistent with the module: 3 branches, batch=2, seq=8,
    # embed_dim=32, output_dim=16.
    K, B, S, E, O = 3, 2, 8, 32, 16

    key = jax.random.PRNGKey(0)
    kx, kw, kb = jax.random.split(key, 3)

    x_stacked = jax.random.normal(kx, (K, B, S, E), dtype=jnp.float32)
    w_stacked = 0.1 * jax.random.normal(kw, (K, O, E), dtype=jnp.float32)
    b_stacked = 0.1 * jax.random.normal(kb, (K, O), dtype=jnp.float32)

    for pt in ("avg", "max"):
        out = modular_pool_forward(x_stacked, w_stacked, b_stacked, pool_type=pt)
        out = jax.block_until_ready(out)
        ref = reference_forward(x_stacked, w_stacked, b_stacked, pool_type=pt)
        assert out.shape == (B, O)
        err = jnp.max(jnp.abs(out - ref))
        assert bool(jnp.allclose(out, ref, atol=1e-5, rtol=1e-5)), \
            f"pool_type={pt}: max abs err {err}"

    print("KERNEL_OK")
</pallas_src>

<mosaic_0001>
module attributes {stable_mosaic.version = 11 : i64} {
  func.func @_modular_pool_kernel(%arg0: i32, %arg1: i32, %arg2: i32, %arg3: memref<1x2x8x32xf32, #tpu.memory_space<vmem>>, %arg4: memref<1x32x16xf32, #tpu.memory_space<vmem>>, %arg5: memref<1x1x16xf32, #tpu.memory_space<vmem>>, %arg6: memref<2x16xf32, #tpu.memory_space<vmem>>, %arg7: memref<2x32xf32, #tpu.memory_space<vmem>>, %arg8: memref<2x16xf32, #tpu.memory_space<vmem>>) attributes {dimension_semantics = [#tpu.dimension_semantics<parallel>, #tpu.dimension_semantics<arbitrary>, #tpu.dimension_semantics<arbitrary>], iteration_bounds = array<i64: 1, 3, 1>, scalar_prefetch = 0 : i64, scratch_operands = 2 : i64, tpu.core_type = #tpu.core_type<tc>, window_params = [{transform_indices = @transform_0, window_bounds = array<i64: 1, 2, 8, 32>}, {transform_indices = @transform_1, window_bounds = array<i64: 1, 32, 16>}, {transform_indices = @transform_2, window_bounds = array<i64: 1, 1, 16>}, {transform_indices = @transform_3, window_bounds = array<i64: 2, 16>}]} {
    %c0_i32 = arith.constant 0 : i32
    %0 = arith.cmpi eq, %arg1, %c0_i32 : i32
    %c0_i32_0 = arith.constant 0 : i32
    %1 = arith.cmpi eq, %arg2, %c0_i32_0 : i32
    %2 = arith.andi %0, %1 : i1
    %3 = arith.extui %2 : i1 to i32
    %c0_i32_1 = arith.constant 0 : i32
    %4 = arith.cmpi ne, %3, %c0_i32_1 : i32
    scf.if %4 {
      %cst_15 = arith.constant 0.000000e+00 : f32
      %22 = vector.broadcast %cst_15 : f32 to vector<2x16xf32>
      %c0_16 = arith.constant 0 : index
      %c0_17 = arith.constant 0 : index
      %23 = vector.load %arg8[%c0_16, %c0_17] : memref<2x16xf32, #tpu.memory_space<vmem>>, vector<2x16xf32>
      tpu.vector_store %arg8[%c0_16, %c0_17], %22 {strides = array<i32>} : memref<2x16xf32, #tpu.memory_space<vmem>>, vector<2x16xf32>,
    } else {
    }
    %c0_i32_2 = arith.constant 0 : i32
    %5 = arith.cmpi eq, %arg2, %c0_i32_2 : i32
    %6 = arith.extui %5 : i1 to i32
    %c0_i32_3 = arith.constant 0 : i32
    %7 = arith.cmpi ne, %6, %c0_i32_3 : i32
    scf.if %7 {
      %cst_15 = arith.constant 0.000000e+00 : f32
      %22 = vector.broadcast %cst_15 : f32 to vector<2x32xf32>
      %c0_16 = arith.constant 0 : index
      %c0_17 = arith.constant 0 : index
      %23 = vector.load %arg7[%c0_16, %c0_17] : memref<2x32xf32, #tpu.memory_space<vmem>>, vector<2x32xf32>
      tpu.vector_store %arg7[%c0_16, %c0_17], %22 {strides = array<i32>} : memref<2x32xf32, #tpu.memory_space<vmem>>, vector<2x32xf32>,
    } else {
    }
    %c0 = arith.constant 0 : index
    %c0_4 = arith.constant 0 : index
    %8 = vector.load %arg7[%c0, %c0_4] : memref<2x32xf32, #tpu.memory_space<vmem>>, vector<2x32xf32>
    %c0_5 = arith.constant 0 : index
    %c0_6 = arith.constant 0 : index
    %c0_7 = arith.constant 0 : index
    %c0_8 = arith.constant 0 : index
    %9 = vector.load %arg3[%c0_5, %c0_6, %c0_7, %c0_8] : memref<1x2x8x32xf32, #tpu.memory_space<vmem>>, vector<1x2x8x32xf32>
    %10 = vector.shape_cast %9 : vector<1x2x8x32xf32> to vector<2x8x32xf32>
    %cst = arith.constant dense<0.000000e+00> : vector<2x32xf32>
    %11 = vector.multi_reduction <add>, %10, %cst [1] : vector<2x8x32xf32> to vector<2x32xf32>
    %12 = arith.addf %8, %11 : vector<2x32xf32>
    %c0_9 = arith.constant 0 : index
    %c0_10 = arith.constant 0 : index
    %13 = vector.load %arg7[%c0_9, %c0_10] : memref<2x32xf32, #tpu.memory_space<vmem>>, vector<2x32xf32>
    tpu.vector_store %arg7[%c0_9, %c0_10], %12 {strides = array<i32>} : memref<2x32xf32, #tpu.memory_space<vmem>>, vector<2x32xf32>,
    %c0_i32_11 = arith.constant 0 : i32
    %14 = arith.cmpi eq, %arg2, %c0_i32_11 : i32
    %15 = arith.extui %14 : i1 to i32
    %c0_i32_12 = arith.constant 0 : i32
    %16 = arith.cmpi ne, %15, %c0_i32_12 : i32
    scf.if %16 {
      %c0_15 = arith.constant 0 : index
      %c0_16 = arith.constant 0 : index
      %22 = vector.load %arg7[%c0_15, %c0_16] : memref<2x32xf32, #tpu.memory_space<vmem>>, vector<2x32xf32>
      %cst_17 = arith.constant 1.250000e-01 : f32
      %23 = vector.broadcast %cst_17 : f32 to vector<2x32xf32>
      %24 = arith.mulf %22, %23 : vector<2x32xf32>
      %c0_18 = arith.constant 0 : index
      %c0_19 = arith.constant 0 : index
      %c0_20 = arith.constant 0 : index
      %25 = vector.load %arg4[%c0_18, %c0_19, %c0_20] : memref<1x32x16xf32, #tpu.memory_space<vmem>>, vector<1x32x16xf32>
      %26 = vector.shape_cast %25 : vector<1x32x16xf32> to vector<32x16xf32>
      %cst_21 = arith.constant dense<0.000000e+00> : vector<2x16xf32>
      %27 = tpu.matmul %24, %26, %cst_21 {dimension_numbers = #tpu.dot_dimension_numbers<[1], [0], [0], [1], [0, 0, 1, 1], [], []>} : vector<2x32xf32>, vector<32x16xf32>, vector<2x16xf32> -> vector<2x16xf32>
      %c0_22 = arith.constant 0 : index
      %c0_23 = arith.constant 0 : index
      %c0_24 = arith.constant 0 : index
      %28 = vector.load %arg5[%c0_22, %c0_23, %c0_24] : memref<1x1x16xf32, #tpu.memory_space<vmem>>, vector<1x1x16xf32>
      %29 = vector.shape_cast %28 : vector<1x1x16xf32> to vector<1x16xf32>
      %30 = vector.broadcast %29 : vector<1x16xf32> to vector<2x16xf32>
      %31 = arith.addf %27, %30 : vector<2x16xf32>
      %cst_25 = arith.constant 0.000000e+00 : f32
      %32 = vector.broadcast %cst_25 : f32 to vector<2x16xf32>
      %33 = arith.maximumf %31, %32 : vector<2x16xf32>
      %c0_26 = arith.constant 0 : index
      %c0_27 = arith.constant 0 : index
      %34 = vector.load %arg8[%c0_26, %c0_27] : memref<2x16xf32, #tpu.memory_space<vmem>>, vector<2x16xf32>
      %35 = arith.addf %34, %33 : vector<2x16xf32>
      %c0_28 = arith.constant 0 : index
      %c0_29 = arith.constant 0 : index
      %36 = vector.load %arg8[%c0_28, %c0_29] : memref<2x16xf32, #tpu.memory_space<vmem>>, vector<2x16xf32>
      tpu.vector_store %arg8[%c0_28, %c0_29], %35 {strides = array<i32>} : memref<2x16xf32, #tpu.memory_space<vmem>>, vector<2x16xf32>,
    } else {
    }
    %c2_i32 = arith.constant 2 : i32
    %17 = arith.cmpi eq, %arg1, %c2_i32 : i32
    %c0_i32_13 = arith.constant 0 : i32
    %18 = arith.cmpi eq, %arg2, %c0_i32_13 : i32
    %19 = arith.andi %17, %18 : i1
    %20 = arith.extui %19 : i1 to i32
    %c0_i32_14 = arith.constant 0 : i32
    %21 = arith.cmpi ne, %20, %c0_i32_14 : i32
    scf.if %21 {
      %c0_15 = arith.constant 0 : index
      %c0_16 = arith.constant 0 : index
      %22 = vector.load %arg8[%c0_15, %c0_16] : memref<2x16xf32, #tpu.memory_space<vmem>>, vector<2x16xf32>
      %cst_17 = arith.constant 0.333333343 : f32
      %23 = vector.broadcast %cst_17 : f32 to vector<2x16xf32>
      %24 = arith.mulf %22, %23 : vector<2x16xf32>
      %c0_18 = arith.constant 0 : index
      %c0_19 = arith.constant 0 : index
      %25 = vector.load %arg6[%c0_18, %c0_19] : memref<2x16xf32, #tpu.memory_space<vmem>>, vector<2x16xf32>
      tpu.vector_store %arg6[%c0_18, %c0_19], %24 {strides = array<i32>} : memref<2x16xf32, #tpu.memory_space<vmem>>, vector<2x16xf32>,
    } else {
    }
    return
  }
  func.func @transform_0(%arg0: i32, %arg1: i32, %arg2: i32) -> (i32, i32, i32, i32) {
    %c0_i32 = arith.constant 0 : i32
    %c0_i32_0 = arith.constant 0 : i32
    return %arg1, %arg0, %arg2, %c0_i32 : i32, i32, i32, i32
  }
  func.func @transform_1(%arg0: i32, %arg1: i32, %arg2: i32) -> (i32, i32, i32) {
    %c0_i32 = arith.constant 0 : i32
    %c0_i32_0 = arith.constant 0 : i32
    %c0_i32_1 = arith.constant 0 : i32
    return %arg1, %c0_i32, %c0_i32_0 : i32, i32, i32
  }
  func.func @transform_2(%arg0: i32, %arg1: i32, %arg2: i32) -> (i32, i32, i32) {
    %c0_i32 = arith.constant 0 : i32
    %c0_i32_0 = arith.constant 0 : i32
    %c0_i32_1 = arith.constant 0 : i32
    return %arg1, %c0_i32, %c0_i32_0 : i32, i32, i32
  }
  func.func @transform_3(%arg0: i32, %arg1: i32, %arg2: i32) -> (i32, i32) {
    %c0_i32 = arith.constant 0 : i32
    %c0_i32_0 = arith.constant 0 : i32
    return %arg0, %c0_i32 : i32, i32
  }
}

</mosaic_0001>

<bundles_post_ra>
// kernel: tpu_custom_call.1
= control target key start
LH: loop header
LB: loop body
LE: loop exit
PB: predicated region body
PF: predicated region fallthrough
CT: control target
= control target key end

     0   :  { %8 = vsyncpa [#allocation5], 0  ;;  %s622_s12 = smov 0   ;;  %s624_s13 = smov 0   ;;  %s697_s0 = inlined_call_operand.vmem [shape: f32[3,2,8,32], index: 0, kind: input, shape index: {}]   ;;  %s698_s1 = inlined_call_operand.vmem [shape: f32[3,32,16], index: 1, kind: input, shape index: {}]   ;;  %s699_s2 = inlined_call_operand.vmem [shape: f32[3,1,16], index: 2, kind: input, shape index: {}]   ;;  %s700_s3 = inlined_call_operand.hbm [shape: f32[2,16], index: 3, kind: output, shape index: {}]  }
   0x1   :  { %s626_s14 = smov 0  }
   0x2 LB: > { %s476_s15 = sadd.s32 4294967295, %s596_s14   ;;  %s29_s16 = sadd.s32 1, %s592_s13  ;;  %s596_s14 = sphi %s626_s14, %s14_s14   ;;  %s592_s13 = sphi %s624_s13, %s703_s13   ;;  %s588_s12 = sphi %s622_s12, %s702_s12  }
   0x3   : > { %p31_p0 = scmp.ge.s32.totalorder %s29_s16, 3  ;;  %p479_p1 = scmp.ge.s32.totalorder %s596_s14, 1 }
   0x4   : > { %p187_p2 = scmp.lt.s32.totalorder %s596_s14, 4 }
   0x5   : > { %s705_s16 = smov (%p31_p0, %s29_s16), 0 }
   0x6   : > { %p188_p3 = pnand %p479_p1, %p187_p2 }
   0x7   : > { %p222_p4 = scmp.lt.s32.totalorder (!%p188_p3), %s588_s12, 2  ;;  %p242_p5 = scmp.eq.s32.totalorder (!%p188_p3), %s588_s12, 0 }
   0x8   : > { %191 = sbr.rel (%p188_p3) target bundleno = 272 (0x110), region = 32 }
   0xd   : > { %s646_s17 = scalar_select %p222_p4, %s588_s12, 2  ;;  %vm248_vm0 = vcmask (%p242_p5), 123904   ;;  %v598_v0 = vmov (%p242_p5), 0.0  }
   0xe   : > { %247 = sbr.rel (!%p242_p5) target bundleno = 19 (0x13), region = 36  ;;  %249 = vst.msk [vmem:[#allocation3] sm:$0x3] (%p242_p5), %vm248_vm0, %v598_v0 }
   0xf   : > { %s492_s18 = sshll.u32 %s646_s17, 4  ;;  %s493_s19 = sshll.u32 %s646_s17, 5 }
  0x10   : > { %s232_s22 = scalar_lea.vmem %s697_s0, %s492_s18  ;;  %s238_s25 = scalar_lea.vmem %s698_s1, %s493_s19 }
  0x11   : > { %s241_s28 = scalar_lea.vmem %s699_s2, %s646_s17 }
  0x13 PF: > { %vm253_vm1 = vcmask 254976   ;;  %v289_v1 = vld [vmem:[%s238_s25 + $0x18] sm:$0xff]  ;;  %v599_v2 = vmov 0.0   ;;  %v288_v3 = vld [vmem:[%s238_s25 + $0x10] sm:$0xff]  ;;  %vm600_vm2 = vmmov 0   ;;  %v256_v4 = vld [vmem:[%s232_s22] sm:$0xff] }
  0x14   : > { %254 = vst.msk [vmem:[#allocation2] sm:$0x3] %vm253_vm1, %v599_v2  ;;  %501 = vmatprep.subr.mxu0 %v599_v2  ;;  %509 = vmatprep.mubr.msk.f32.mxu0 %vm600_vm2, %v599_v2  ;;  %v257_v5 = vld [vmem:[%s232_s22 + $0x8] sm:$0xff]  ;;  %vm258_vm3 = vcmask 261120   ;;  %v286_v11 = vld [vmem:[%s238_s25] sm:$0xff]  ;;  %vm275_vm4 = vcmask 1041409  }
  0x15   : > { %502 = vmatpush3.msra.mxu0 %v289_v1  ;;  %v259_v6 = vsel %vm258_vm3, %v256_v4, 0.0  ;;  %v266_v7 = vsel %vm258_vm3, %v257_v5, 0.0  ;;  %v287_v8 = vld [vmem:[%s238_s25 + $0x8] sm:$0xff]  ;;  %p375_p6 = scmp.eq.s32.totalorder %s588_s12, 2  ;;  %v485_v27 = vld [vmem:[%s241_s28] ss:$0 sm:$0xff] }
  0x16   : > { %503 = vmatprep.subr.mxu0 %v599_v2  ;;  %v260_v9 = vrot.slane %v259_v6, 4  ;;  %v267_v10 = vrot.slane %v266_v7, 4  ;;  %v371_v30 = vld [vmem:[#allocation3] sm:$0x3]  ;;  %vm373_vm5 = vcmask 123904  }
  0x17   : > { %504 = vmatpush3.msra.mxu0 %v288_v3 }
  0x18   : > { %505 = vmatprep.subr.mxu0 %v599_v2  ;;  %v261_v12 = vadd.f32 %v260_v9, %v259_v6  ;;  %v268_v13 = vadd.f32 %v267_v10, %v266_v7 }
  0x19   : > { %506 = vmatpush3.msra.mxu0 %v287_v8 }
  0x1a   : > { %507 = vmatprep.subr.mxu0 %v599_v2  ;;  %v262_v14 = vrot.slane %v261_v12, 2  ;;  %v269_v15 = vrot.slane %v268_v13, 2 }
  0x1b   : > { %508 = vmatpush3.msra.mxu0 %v286_v11  ;;  %v255_v20 = vld [vmem:[#allocation2] sm:$0x3] }
  0x1c   : > { %v263_v16 = vadd.f32 %v262_v14, %v261_v12  ;;  %v270_v17 = vadd.f32 %v269_v15, %v268_v13 }
  0x1e   : > { %v264_v18 = vrot.slane %v263_v16, 1  ;;  %v271_v19 = vrot.slane %v270_v17, 1 }
  0x20   : > { %v265_v21 = vadd.f32 %v264_v18, %v263_v16  ;;  %v272_v22 = vadd.f32 %v271_v19, %v270_v17 }
  0x22   : > { %v276_v23 = vsel %vm275_vm4, %v272_v22, %v265_v21 }
  0x23   : > { %v278_v24 = vadd.f32 %v276_v23, %v255_v20 }
  0x25   : > { %280 = vst.msk [vmem:[#allocation2] sm:$0x3] %vm253_vm1, %v278_v24 }
  0x2c   : > { %v284_v25 = vld [vmem:[#allocation2] sm:$0x3] }
  0x2d   : > { %v285_v26 = vmul.f32 0.125, %v284_v25 }
  0x2f   : > { %510 = vmatmul.mubr.msk.f32.vlgmr.msra.gmra.mxu0 %vm258_vm3, %v285_v26 }
  0xef   : > { %v366_v28 = vpop.f32.mrf.mxu0 }
  0xf0   : > { %v367_v29 = vadd.f32 %v485_v27, %v366_v28 }
  0xf1   : > { %v511_v31 = vpop.f32.mrf.mxu0 }
  0xf2   : > { %v370_v32 = vmax.f32 %v367_v29, 0.0  ;;  %379 = sbr.rel (!%p375_p6) target bundleno = 257 (0x101), region = 48 }
  0xf4   : > { %v372_v33 = vadd.f32 %v371_v30, %v370_v32 }
  0xf6   : > { %374 = vst.msk [vmem:[#allocation3] sm:$0x3] %vm373_vm5, %v372_v33 }
  0xfd   : > { %v380_v34 = vld [vmem:[#allocation3] sm:$0x3] }
  0xfe   : > { %v381_v35 = vmul.f32 0.33333334, %v380_v34 }
 0x100   : > { %383 = vst.msk [vmem:[#allocation4] sm:$0x3] %vm373_vm5, %v381_v35 }
 0x101 PF: > { %p673_p7 = scmp.eq.s32.totalorder %s476_s15, 2  ;;  %s601_s5 = smov [#allocation4]  }
 0x102   : > { %s393_s6 = sshll.u32 %s601_s5, 4  ;;  %s394_s6 = int_to_ptr.vmem [resolvable:$true] %s393_s6 }
 0x103   : > { %s546_s7 = scalar_lea.vmem %s394_s6, 32  ;;  %p553_p11 = scmp.lt.s32.totalorder %s394_s6, %s394_s6 }
 0x104   : > { %p547_p8 = scmp.ne.s32.totalorder %s394_s6, %s546_s7  ;;  %p554_p12 = scmp.lt.s32.totalorder %s546_s7, %s546_s7 }
 0x106   : > { %p548_p9 = pnand %p547_p8, %p673_p7  ;;  %p555_p13 = por %p554_p12, %p553_p11 }
 0x108   : > { %p549_p10 = pneg %p548_p9 }
 0x10a   : > { %p556_p0 = pnand %p555_p13, %p549_p10 }
 0x10c   : > { %559 = shalt.err (!%p556_p0)
}
 0x10d   : > { %513 = dma.vmem_to_hbm [thread:$0]  (%p673_p7), %s394_s6, 32, %s700_s3, [#allocation5]  }
 0x10e   : > { %583 = dma.done.wait (%p673_p7), [#allocation5], 32  }
 0x10f   : > { %585 = vsyncadd (%p673_p7), [#allocation5], 4294967264 }
 0x110 PF: > { %s14_s14 = sadd.s32 1, %s596_s14   ;;  %s702_s12 = smov %s592_s13 }
 0x111   : > { %p11_p1 = scmp.ge.s32.totalorder %s14_s14, 5   ;;  %s703_s13 = smov %s705_s16 }
 0x113   :  { %13 = sbr.rel (!%p11_p1) target bundleno = 2 (0x2), region = 82 }
 0x118   :  { %406 = vsyncpa [#allocation5], 1 }
 0x119   :  { %408 = vsyncpa [#allocation5 + $0x1], 1 }

</bundles_post_ra>
